<compile_context>
chip_gen: v5e
topology: v5e:2x2
jax: 0.10.0
libtpu: 0.0.40
codegen_flags: <defaults>
</compile_context>

<pallas_src>
import jax
import jax.numpy as jnp
from jax import lax
from jax.experimental import pallas as pl
from jax.experimental.pallas import tpu as pltpu

BATCH = 2
SEQ = 8
HIDDEN = 32
VOCAB = 64
OUT_W = 128  # lane-dense fused output width: [logits (VOCAB) | value (1) | pad]

_VMEM = pl.BlockSpec(memory_space=pltpu.MemorySpace.VMEM)


# ----------------------------- Pallas kernel ------------------------------- #
def _fused_kernel(ids_ref, emb_ref, wh_ref, bh_ref, wo_ref, bo_ref, out_ref):
    # ids: (M, 1) i32      emb: (V, 2H) bf16
    # wh : (2H, 2H) bf16   bh : (1, 2H) f32
    # wo : (2H, 128) bf16  bo : (1, 128) f32
    # out: (M, 128) f32
    m = ids_ref.shape[0]
    vocab = emb_ref.shape[0]

    # Embedding lookup as a one-hot MXU matmul (exact selection, bf16 operands).
    one_hot = (
        ids_ref[...] == lax.broadcasted_iota(jnp.int32, (m, vocab), 1)
    ).astype(jnp.bfloat16)
    x = jnp.dot(one_hot, emb_ref[...], preferred_element_type=jnp.float32)

    # Packed hidden layer: h[:, :H] = policy path, h[:, H:] = critic path.
    h = jnp.tanh(
        jnp.dot(x.astype(jnp.bfloat16), wh_ref[...],
                preferred_element_type=jnp.float32)
        + bh_ref[...]
    )

    # Packed heads: cols [0, V) = lm logits, col V = value, rest zero padding.
    out_ref[...] = (
        jnp.dot(h.astype(jnp.bfloat16), wo_ref[...],
                preferred_element_type=jnp.float32)
        + bo_ref[...]
    )


def _fused_forward(ids_flat, packed):
    m = ids_flat.shape[0]
    h2 = 2 * HIDDEN
    flops = 2 * m * (VOCAB * h2 + h2 * h2 + h2 * OUT_W)
    bytes_accessed = (
        4 * m                      # ids
        + 2 * VOCAB * h2           # emb (bf16)
        + 2 * h2 * h2              # wh  (bf16)
        + 4 * h2                   # bh
        + 2 * h2 * OUT_W           # wo  (bf16)
        + 4 * OUT_W                # bo
        + 4 * m * OUT_W            # out
    )
    return pl.pallas_call(
        _fused_kernel,
        out_shape=jax.ShapeDtypeStruct((m, OUT_W), jnp.float32),
        in_specs=[_VMEM] * 6,
        out_specs=_VMEM,
        cost_estimate=pl.CostEstimate(
            flops=flops, transcendentals=m * h2, bytes_accessed=bytes_accessed
        ),
    )(
        ids_flat.reshape(m, 1),
        packed["emb"],
        packed["wh"],
        packed["bh"],
        packed["wo"],
        packed["bo"],
    )


# --------------------------- params & packing ------------------------------ #
def init_params(key):
    ks = jax.random.split(key, 8)
    scale = 0.25
    return {
        # policy
        "policy_emb": scale * jax.random.normal(ks[0], (VOCAB, HIDDEN), jnp.float32),
        "w1": scale * jax.random.normal(ks[1], (HIDDEN, HIDDEN), jnp.float32),
        "b1": scale * jax.random.normal(ks[2], (1, HIDDEN), jnp.float32),
        "wlm": scale * jax.random.normal(ks[3], (HIDDEN, VOCAB), jnp.float32),
        "blm": scale * jax.random.normal(ks[4], (1, VOCAB), jnp.float32),
        # critic backbone + score head
        "critic_emb": scale * jax.random.normal(ks[5], (VOCAB, HIDDEN), jnp.float32),
        "wc": scale * jax.random.normal(ks[6], (HIDDEN, HIDDEN), jnp.float32),
        "bc": jnp.zeros((1, HIDDEN), jnp.float32),
        "ws": scale * jax.random.normal(ks[7], (HIDDEN, 1), jnp.float32),
        "bs": jnp.zeros((1, 1), jnp.float32),
    }


def pack_params(p):
    """Pack policy + critic weights into block-diagonal, lane-padded operands."""
    h2 = 2 * HIDDEN
    emb = jnp.concatenate([p["policy_emb"], p["critic_emb"]], axis=1)  # (V, 2H)
    wh = jnp.zeros((h2, h2), jnp.float32)
    wh = wh.at[:HIDDEN, :HIDDEN].set(p["w1"]).at[HIDDEN:, HIDDEN:].set(p["wc"])
    bh = jnp.concatenate([p["b1"], p["bc"]], axis=1)                   # (1, 2H)
    wo = jnp.zeros((h2, OUT_W), jnp.float32)
    wo = wo.at[:HIDDEN, :VOCAB].set(p["wlm"])
    wo = wo.at[HIDDEN:, VOCAB:VOCAB + 1].set(p["ws"])
    bo = jnp.zeros((1, OUT_W), jnp.float32)
    bo = bo.at[:, :VOCAB].set(p["blm"]).at[:, VOCAB:VOCAB + 1].set(p["bs"])
    return {
        "emb": emb.astype(jnp.bfloat16),
        "wh": wh.astype(jnp.bfloat16),
        "bh": bh,                       # f32 epilogue
        "wo": wo.astype(jnp.bfloat16),
        "bo": bo,                       # f32 epilogue
    }


# ------------------------------ wrapper (glue) ------------------------------ #
@jax.jit
def policy_and_value_forward(input_ids, packed):
    """Mirrors PolicyAndValueWrapper.forward: returns (policy_logits, values)."""
    b, s = input_ids.shape
    out = _fused_forward(input_ids.reshape(b * s), packed)
    policy_logits = out[:, :VOCAB].reshape(b, s, VOCAB)
    values = out[:, VOCAB:VOCAB + 1].reshape(b, s, 1)
    return policy_logits, values


# TODO(synk): the real wrapper delegates to arbitrary HF policy / value models;
# both are synthesized here as embed -> tanh(dense) backbones with lm_head /
# score heads, which preserves the forward's structure and output shapes.


if __name__ == "__main__":
    key = jax.random.PRNGKey(0)
    pkey, dkey = jax.random.split(key)
    params = init_params(pkey)
    packed = pack_params(params)
    input_ids = jax.random.randint(dkey, (BATCH, SEQ), 0, VOCAB, dtype=jnp.int32)

    policy_logits, values = policy_and_value_forward(input_ids, packed)
    jax.block_until_ready((policy_logits, values))

    assert policy_logits.shape == (BATCH, SEQ, VOCAB)
    assert values.shape == (BATCH, SEQ, 1)

    # (1) Exact-path check: pure-JAX reference mirroring the kernel's bf16
    #     operand casts (f32 accumulation) — tight tolerance.
    ids_flat = input_ids.reshape(-1, 1)
    one_hot = (ids_flat == jnp.arange(VOCAB)[None, :]).astype(jnp.bfloat16)
    x = jnp.dot(one_hot, packed["emb"], preferred_element_type=jnp.float32)
    h = jnp.tanh(
        jnp.dot(x.astype(jnp.bfloat16), packed["wh"],
                preferred_element_type=jnp.float32) + packed["bh"])
    ref_out = jnp.dot(h.astype(jnp.bfloat16), packed["wo"],
                      preferred_element_type=jnp.float32) + packed["bo"]
    ref_logits_bf = ref_out[:, :VOCAB].reshape(BATCH, SEQ, VOCAB)
    ref_values_bf = ref_out[:, VOCAB:VOCAB + 1].reshape(BATCH, SEQ, 1)
    assert jnp.allclose(policy_logits, ref_logits_bf, atol=2e-3)
    assert jnp.allclose(values, ref_values_bf, atol=2e-3)

    # (2) Semantic check against the original full-f32 module math
    #     (looser tolerance due to bf16 matmul operands in the kernel).
    x_p = params["policy_emb"][input_ids].reshape(BATCH * SEQ, HIDDEN)
    ref_p = (jnp.tanh(x_p @ params["w1"] + params["b1"]) @ params["wlm"]
             + params["blm"]).reshape(BATCH, SEQ, VOCAB)
    x_v = params["critic_emb"][input_ids].reshape(BATCH * SEQ, HIDDEN)
    ref_v = (jnp.tanh(x_v @ params["wc"] + params["bc"]) @ params["ws"]
             + params["bs"]).reshape(BATCH, SEQ, 1)
    assert jnp.allclose(policy_logits, ref_p, atol=3e-2)
    assert jnp.allclose(values, ref_v, atol=3e-2)

    print("KERNEL_OK")
</pallas_src>

<mosaic_0001>
module attributes {stable_mosaic.version = 11 : i64} {
  func.func @_fused_kernel(%arg0: memref<16x1xi32, #tpu.memory_space<vmem>>, %arg1: memref<64x64xbf16, #tpu.memory_space<vmem>>, %arg2: memref<64x64xbf16, #tpu.memory_space<vmem>>, %arg3: memref<1x64xf32, #tpu.memory_space<vmem>>, %arg4: memref<64x128xbf16, #tpu.memory_space<vmem>>, %arg5: memref<1x128xf32, #tpu.memory_space<vmem>>, %arg6: memref<16x128xf32, #tpu.memory_space<vmem>>) attributes {dimension_semantics = [], scalar_prefetch = 0 : i64, scratch_operands = 0 : i64, tpu.core_type = #tpu.core_type<tc>} {
    %c0 = arith.constant 0 : index
    %c0_0 = arith.constant 0 : index
    %0 = vector.load %arg0[%c0, %c0_0] : memref<16x1xi32, #tpu.memory_space<vmem>>, vector<16x1xi32>
    %1 = tpu.iota {dimensions = array<i32: 1>} : vector<16x64xi32>
    %2 = vector.broadcast %0 : vector<16x1xi32> to vector<16x64xi32>
    %3 = arith.cmpi eq, %2, %1 : vector<16x64xi32>
    %4 = arith.extui %3 : vector<16x64xi1> to vector<16x64xi32>
    %5 = arith.sitofp %4 : vector<16x64xi32> to vector<16x64xf32>
    %6 = arith.truncf %5 : vector<16x64xf32> to vector<16x64xbf16>
    %c0_1 = arith.constant 0 : index
    %c0_2 = arith.constant 0 : index
    %7 = vector.load %arg1[%c0_1, %c0_2] : memref<64x64xbf16, #tpu.memory_space<vmem>>, vector<64x64xbf16>
    %cst = arith.constant dense<0.000000e+00> : vector<16x64xf32>
    %8 = tpu.matmul %6, %7, %cst {dimension_numbers = #tpu.dot_dimension_numbers<[1], [0], [0], [1], [0, 0, 1, 1], [], []>} : vector<16x64xbf16>, vector<64x64xbf16>, vector<16x64xf32> -> vector<16x64xf32>
    %9 = arith.truncf %8 : vector<16x64xf32> to vector<16x64xbf16>
    %c0_3 = arith.constant 0 : index
    %c0_4 = arith.constant 0 : index
    %10 = vector.load %arg2[%c0_3, %c0_4] : memref<64x64xbf16, #tpu.memory_space<vmem>>, vector<64x64xbf16>
    %cst_5 = arith.constant dense<0.000000e+00> : vector<16x64xf32>
    %11 = tpu.matmul %9, %10, %cst_5 {dimension_numbers = #tpu.dot_dimension_numbers<[1], [0], [0], [1], [0, 0, 1, 1], [], []>} : vector<16x64xbf16>, vector<64x64xbf16>, vector<16x64xf32> -> vector<16x64xf32>
    %c0_6 = arith.constant 0 : index
    %c0_7 = arith.constant 0 : index
    %12 = vector.load %arg3[%c0_6, %c0_7] : memref<1x64xf32, #tpu.memory_space<vmem>>, vector<1x64xf32>
    %13 = vector.broadcast %12 : vector<1x64xf32> to vector<16x64xf32>
    %14 = arith.addf %11, %13 : vector<16x64xf32>
    %15 = math.tanh %14 : vector<16x64xf32>
    %16 = arith.truncf %15 : vector<16x64xf32> to vector<16x64xbf16>
    %c0_8 = arith.constant 0 : index
    %c0_9 = arith.constant 0 : index
    %17 = vector.load %arg4[%c0_8, %c0_9] : memref<64x128xbf16, #tpu.memory_space<vmem>>, vector<64x128xbf16>
    %cst_10 = arith.constant dense<0.000000e+00> : vector<16x128xf32>
    %18 = tpu.matmul %16, %17, %cst_10 {dimension_numbers = #tpu.dot_dimension_numbers<[1], [0], [0], [1], [0, 0, 1, 1], [], []>} : vector<16x64xbf16>, vector<64x128xbf16>, vector<16x128xf32> -> vector<16x128xf32>
    %c0_11 = arith.constant 0 : index
    %c0_12 = arith.constant 0 : index
    %19 = vector.load %arg5[%c0_11, %c0_12] : memref<1x128xf32, #tpu.memory_space<vmem>>, vector<1x128xf32>
    %20 = vector.broadcast %19 : vector<1x128xf32> to vector<16x128xf32>
    %21 = arith.addf %18, %20 : vector<16x128xf32>
    %c0_13 = arith.constant 0 : index
    %c0_14 = arith.constant 0 : index
    %22 = vector.load %arg6[%c0_13, %c0_14] : memref<16x128xf32, #tpu.memory_space<vmem>>, vector<16x128xf32>
    tpu.vector_store %arg6[%c0_13, %c0_14], %21 {strides = array<i32>} : memref<16x128xf32, #tpu.memory_space<vmem>>, vector<16x128xf32>,
    return
  }
}

</mosaic_0001>

<bundles_post_ra>
// kernel: policy_and_value_forward.1
= control target key start
LH: loop header
LB: loop body
LE: loop exit
PB: predicated region body
PF: predicated region fallthrough
CT: control target
= control target key end

     0   :  { %11 = vsyncpa [#allocation3], 0  ;;  %s483_s0 = inlined_call_operand.vmem [shape: s32[16,1], index: 0, kind: input, shape index: {}]   ;;  %s484_s1 = inlined_call_operand.hbm [shape: bf16[64,64], index: 1, kind: input, shape index: {}]   ;;  %s485_s2 = inlined_call_operand.hbm [shape: bf16[64,64], index: 2, kind: input, shape index: {}]   ;;  %s486_s3 = inlined_call_operand.vmem [shape: f32[1,64], index: 3, kind: input, shape index: {}]   ;;  %s487_s4 = inlined_call_operand.hbm [shape: bf16[64,128], index: 4, kind: input, shape index: {}]   ;;  %s488_s5 = inlined_call_operand.vmem [shape: f32[1,128], index: 5, kind: input, shape index: {}]   ;;  %s489_s6 = inlined_call_operand.vmem [shape: f32[16,128], index: 6, kind: output, shape index: {}]  }
   0x1   :  { %12 = vsyncpa [#allocation5], 0  ;;  %s32_s23 = sshll.u32 %s485_s2, 4  ;;  %s411_s24 = smov [#allocation4]   ;;  %s33_s23 = int_to_ptr.hbm [resolvable:$true] %s32_s23 }
   0x2   :  { %s34_s25 = sshll.u32 %s411_s24, 4  ;;  %s19_s28 = sshll.u32 %s484_s1, 4  ;;  %s35_s25 = int_to_ptr.vmem [resolvable:$true] %s34_s25  ;;  %s20_s28 = int_to_ptr.hbm [resolvable:$true] %s19_s28 }
   0x3   :  { %s412_s29 = smov 64   ;;  %s413_s30 = smov 4  }
   0x4   :  { %40 = dma.hbm_to_vmem [thread:$0]  %s33_s23, 512, %s35_s25, [#allocation5], %s412_s29, %s412_s29, %s413_s30  }
   0x5   :  { %s414_s7 = smov [#allocation2]   ;;  %s47_s11 = sshll.u32 %s487_s4, 4  ;;  %s48_s11 = int_to_ptr.hbm [resolvable:$true] %s47_s11 }
   0x6   :  { %s21_s8 = sshll.u32 %s414_s7, 4  ;;  %s415_s2 = smov [#allocation6]   ;;  %s22_s8 = int_to_ptr.vmem [resolvable:$true] %s21_s8 }
   0x7   :  { %27 = dma.hbm_to_vmem [thread:$0]  %s20_s28, 512, %s22_s8, [#allocation3], %s412_s29, %s412_s29, %s413_s30  }
   0x8   :  { %s49_s12 = sshll.u32 %s415_s2, 4  ;;  %s50_s12 = int_to_ptr.vmem [resolvable:$true] %s49_s12 }
   0x9   :  { %55 = dma.hbm_to_vmem [thread:$0]  %s48_s11, 512, %s50_s12, [#allocation5], %s412_s29, %s412_s29, %s413_s30  }
   0xa   :  { %407 = dma.done.wait [#allocation3], 512  }
   0xb   :  { %408 = vsyncadd [#allocation3], 4294966784 }
   0xc   :  { %409 = dma.done.wait [#allocation5], 1024  }
   0xd   :  { %410 = vsyncadd [#allocation5], 4294966272  ;;  %v416_v0 = vmov 0   ;;  %v71_v1 = vld [vmem:[%s483_s0] sm:$0xff]  ;;  %v312_v2 = vld [vmem:[#allocation2 + $0x18] sm:$0xff]  ;;  %v73_v8 = vlaneseq  ;;  %v417_v12 = vmov 0.0  }
   0xe   :  { %328 = vset.pattern.permute.xlu0 %v416_v0  ;;  %128 = vmatpush.bf16.msra.mxu0 %v312_v2  ;;  %v72_v3 = vld [vmem:[%s483_s0 + $0x8] sm:$0xff]  ;;  %v311_v4 = vld [vmem:[#allocation2 + $0x10] sm:$0xff]  ;;  %v309_v6 = vld [vmem:[#allocation2] sm:$0xff]  ;;  %vm120_vm2 = vcmask 523264  }
   0xf   :  { %76 = vperm.xlu0 %328, %v71_v1   ;;  %v310_v5 = vld [vmem:[#allocation2 + $0x8] sm:$0xff]  ;;  %v316_v7 = vld [vmem:[#allocation4 + $0x18] sm:$0xff]  ;;  %v74_v10 = vand.u32 127, %v73_v8  ;;  %v315_v16 = vld [vmem:[#allocation4 + $0x10] sm:$0xff] }
  0x10   :  { %182 = vmatpush.bf16.msra.mxu1 %v316_v7  ;;  %v314_v17 = vld [vmem:[#allocation4 + $0x8] sm:$0xff]  ;;  %v313_v18 = vld [vmem:[#allocation4] sm:$0xff]  ;;  %v320_v22 = vld [vmem:[#allocation6 + $0x18] sm:$0xff] }
  0x11   :  { %238 = vmatpush.bf16.msra.mxu2 %v320_v22  ;;  %v319_v23 = vld [vmem:[#allocation6 + $0x10] sm:$0xff]  ;;  %v318_v24 = vld [vmem:[#allocation6 + $0x8] sm:$0xff]  ;;  %v317_v25 = vld [vmem:[#allocation6] sm:$0xff] }
  0x12   :  { %129 = vmatpush.bf16.msra.mxu0 %v311_v4  ;;  %v329_v27 = vld [vmem:[%s486_s3] ss:$0 sm:$0xff] }
  0x13   :  { %v330_v34 = vld [vmem:[%s488_s5] ss:$0 sm:$0xff] }
  0x14   :  { %183 = vmatpush.bf16.msra.mxu1 %v315_v16 }
  0x15   :  { %239 = vmatpush.bf16.msra.mxu2 %v319_v23 }
  0x16   :  { %130 = vmatpush.bf16.msra.mxu0 %v310_v5 }
  0x17   :  { %79 = vperm.xlu0 %328, %v72_v3  }
  0x18   :  { %184 = vmatpush.bf16.msra.mxu1 %v314_v17 }
  0x19   :  { %240 = vmatpush.bf16.msra.mxu2 %v318_v24 }
  0x1a   :  { %131 = vmatpush.bf16.msra.mxu0 %v309_v6 }
  0x1c   :  { %185 = vmatpush.bf16.msra.mxu1 %v313_v18 }
  0x1d   :  { %241 = vmatpush.bf16.msra.mxu2 %v317_v25 }
  0x81   :  { %v77_v9 = vpop.permute.xlu0 %76 }
  0x82   :  { %vm81_vm0 = vcmp.eq.s32.totalorder %v77_v9, %v74_v10 }
  0x83   :  { %v256_v13 = vsel %vm81_vm0, 1.0, %v417_v12 }
  0x89   :  { %v80_v11 = vpop.permute.xlu0 %79 }
  0x8a   :  { %vm82_vm1 = vcmp.eq.s32.totalorder %v80_v11, %v74_v10 }
  0x8b   :  { %v257_v14 = vsel %vm82_vm1, 1.0, %v417_v12 }
  0x8c   :  { %v87_v15 = vpack.c.bf16 %v257_v14, %v256_v13 }
  0x8e   :  { %274 = vmatmul.msk.bf16.vlgmr.msra.gmra.mxu0 %vm120_vm2, %v87_v15 }
 0x10b   :  { %v133_v19 = vpop.f32.mrf.mxu0 }
 0x113   :  { %v135_v20 = vpop.f32.mrf.mxu0 }
 0x114   :  { %v138_v21 = vpack.c.bf16 %v135_v20, %v133_v19 }
 0x116   :  { %291 = vmatmul.msk.bf16.vlgmr.msra.gmra.mxu1 %vm120_vm2, %v138_v21 }
 0x193   :  { %v187_v26 = vpop.f32.mrf.mxu1 }
 0x194   :  { %v188_v28 = vadd.f32 %v329_v27, %v187_v26 }
 0x196   :  { %331 = vtanh.f32 %v188_v28 }
 0x19b   :  { %v189_v29 = vpop.f32.mrf.mxu1 }
 0x19c   :  { %v190_v30 = vadd.f32 %v329_v27, %v189_v29  ;;  %v332_v31 = vpop.eup %331 }
 0x19e   :  { %333 = vtanh.f32 %v190_v30 }
 0x1a4   :  { %v334_v32 = vpop.eup %333 }
 0x1a5   :  { %v194_v33 = vpack.c.bf16 %v334_v32, %v332_v31 }
 0x1a7   :  { %308 = vmatmul.msk.bf16.vlgmr.msra.gmra.mxu2 %vm120_vm2, %v194_v33 }
 0x22a   :  { %v243_v35 = vpop.f32.mrf.mxu2 }
 0x22b   :  { %v244_v36 = vadd.f32 %v330_v34, %v243_v35 }
 0x22d   :  { %248 = vst [vmem:[%s489_s6] sm:$0xff] %v244_v36 }
 0x232   :  { %v245_v37 = vpop.f32.mrf.mxu2 }
 0x233   :  { %v246_v38 = vadd.f32 %v330_v34, %v245_v37 }
 0x235   :  { %249 = vst [vmem:[%s489_s6 + $0x8] sm:$0xff] %v246_v38 }
 0x236   :  { %254 = vsyncpa [#allocation3], 1 }
 0x237   :  { %255 = vsyncpa [#allocation5], 1 }

</bundles_post_ra>
